<compile_context>
chip_gen: v6e
topology: v6e:2x2x1
jax: 0.10.0
libtpu: 0.0.40
codegen_flags: <defaults>
</compile_context>

<pallas_src>
import jax
import jax.numpy as jnp
from jax.experimental import pallas as pl
from jax.experimental.pallas import tpu as pltpu

# ---------------- small, module-consistent configuration --------------------
N = 2            # batch
C_IN = 16        # in_channels
C_OUT = 16       # out_channels (== C_IN and stride == 1  ->  identity residual)
T = 8            # temporal length
V = 16           # number of graph nodes
K = 3            # graph kernel size  = kernel_size[1]  (A has shape (K, V, V))
KT = 3           # temporal kernel size = kernel_size[0] (odd)
PAD = (KT - 1) // 2
VCI = V * C_IN   # 256 lanes for the input/residual layout
VCO = V * C_OUT  # 256 lanes for the output layout
EPS = 1e-5       # BatchNorm eps


# ----------------------------- Pallas kernel --------------------------------
def st_gcn_kernel(x_ref, m_ref, b1_ref, w2_ref, b2_ref, out_ref):
    # x_ref: (N*T, V*C_IN) f32, whole batch in one block; rows = (n, t), cols = (v, c_in).
    nt = x_ref.shape[0]
    vco = out_ref.shape[-1]

    x = x_ref[...]                                                    # f32, kept for residual

    # ---- fused GCN (1x1 conv + graph contraction) + BN1 (folded) + ReLU ----
    # m_ref (bf16) already contains sum_k A[k] (x) W1[k] with BN1 scale folded into columns;
    # b1_ref holds (conv-bias contracted with A) * bn1_scale + bn1_shift.
    h = jnp.dot(x.astype(jnp.bfloat16), m_ref[...],
                preferred_element_type=jnp.float32) + b1_ref[...]     # (NT, VCO) f32
    h = jnp.maximum(h, 0.0)

    # ---- fused TCN: all KT taps in ONE wide bf16 matmul ----
    # w2_ref is the KT block-diagonal (BN2-folded) operators concatenated along lanes.
    g = jnp.dot(h.astype(jnp.bfloat16), w2_ref[...],
                preferred_element_type=jnp.float32)                   # (NT, KT*VCO) f32

    # Temporal shifts via sublane roll + batch-aware zero-padding mask (XLU/VPU, no MXU).
    row_t = jax.lax.broadcasted_iota(jnp.int32, (nt, 1), 0) % T       # time index of each row
    o = g[:, PAD * vco:(PAD + 1) * vco] + b2_ref[...]                 # centre tap: no shift
    for dt in range(KT):
        if dt == PAD:
            continue
        tap = g[:, dt * vco:(dt + 1) * vco]                           # (NT, VCO)
        # output row r needs tap[r + dt - PAD]; roll by PAD-dt and zero invalid rows
        rolled = pltpu.roll(tap, shift=(PAD - dt) % nt, axis=0)
        src_t = row_t + (dt - PAD)
        valid = (src_t >= 0) & (src_t < T)                            # stays inside its batch
        o = o + jnp.where(valid, rolled, 0.0)

    # ---- residual (identity) + final ReLU ----
    # TODO(synk): train-mode BatchNorm / stochastic Dropout and the 1x1-conv residual
    # branch (needed when C_IN != C_OUT or stride != 1) are not modeled.
    out_ref[...] = jnp.maximum(o + x, 0.0)


# ------------------------------- wrapper -------------------------------------
def st_gcn_forward(x_nchw, A, p):
    n = x_nchw.shape[0]
    nt = n * T
    # NCHW (N, C, T, V) -> rows = (n, t), cols = (v, c):  (N*T, V*C_IN)
    x_rows = jnp.transpose(x_nchw, (0, 2, 3, 1)).reshape(nt, VCI)

    # -------- parameter preparation (plain-JAX glue, all folding in f32) --------
    # BatchNorm (eval) folded to per-channel scale/shift.
    s1 = p['g1'] / jnp.sqrt(p['v1'] + EPS)
    sh1 = p['be1'] - p['m1'] * s1
    s2 = p['g2'] / jnp.sqrt(p['v2'] + EPS)
    sh2 = p['be2'] - p['m2'] * s2
    # Broadcast per-channel vectors to the (v, c) column layout (c minor).
    s1_vc, sh1_vc = jnp.tile(s1, V), jnp.tile(sh1, V)
    s2_vc, sh2_vc = jnp.tile(s2, V), jnp.tile(sh2, V)
    b2_vc = jnp.tile(p['b2'], V)

    # Fused GCN operator: M[(v,cin),(w,cout)] = sum_k A[k][v,w] * W1[k][cout,cin]
    w1 = p['w1'].reshape(K, C_OUT, C_IN)
    M = jnp.einsum('kvw,koc->vcwo', A, w1).reshape(VCI, VCO)
    # Effective GCN bias: b_eff[(w,cout)] = sum_k (sum_v A[k][v,w]) * b1[k,cout]
    b1r = p['b1'].reshape(K, C_OUT)
    b_eff = jnp.einsum('kw,ko->wo', A.sum(axis=1), b1r).reshape(VCO)
    # Fold BN1 scale into M's columns, BN1 shift + scaled bias into one bias row.
    m_eff = M * s1_vc[None, :]
    bias1 = (b_eff * s1_vc + sh1_vc).reshape(1, VCO)

    # Block-diagonal temporal conv: W2blk[dt][(v,cin),(w,cout)] = (v==w) * W2[cout,cin,dt]
    eye_v = jnp.eye(V, dtype=jnp.float32)
    w2blk = jnp.einsum('vw,oid->dviwo', eye_v, p['w2']).reshape(KT, VCO, VCO)
    w2_eff = w2blk * s2_vc[None, None, :]                  # fold BN2 scale into columns
    # Concatenate the KT taps along lanes: (VCO, KT*VCO), lane-dense wide matmul RHS.
    w2cat = jnp.transpose(w2_eff, (1, 0, 2)).reshape(VCO, KT * VCO)
    bias2 = (b2_vc * s2_vc + sh2_vc).reshape(1, VCO)       # conv bias * scale + BN2 shift

    # Ship weights as bf16 (f32 accumulation happens inside the kernel).
    m_eff_bf = m_eff.astype(jnp.bfloat16)
    w2cat_bf = w2cat.astype(jnp.bfloat16)

    # Single block, no grid: every operand is a whole-array VMEM block (default BlockSpecs),
    # weights are staged exactly once.
    out_rows = pl.pallas_call(
        st_gcn_kernel,
        out_shape=jax.ShapeDtypeStruct((nt, VCO), jnp.float32),
    )(x_rows, m_eff_bf, bias1, w2cat_bf, bias2)

    # rows = (n, t), cols = (v, c)  ->  NCHW
    out_nchw = jnp.transpose(out_rows.reshape(n, T, V, C_OUT), (0, 3, 1, 2))
    return out_nchw, A


# --------------------- deterministic parameter init --------------------------
def init_params(key):
    ks = jax.random.split(key, 12)
    p = {}
    p['w1'] = 0.1 * jax.random.normal(ks[0], (K * C_OUT, C_IN), jnp.float32)
    p['b1'] = 0.1 * jax.random.normal(ks[1], (K * C_OUT,), jnp.float32)
    p['w2'] = 0.1 * jax.random.normal(ks[2], (C_OUT, C_OUT, KT), jnp.float32)
    p['b2'] = 0.1 * jax.random.normal(ks[3], (C_OUT,), jnp.float32)
    p['g1'] = 1.0 + 0.1 * jax.random.normal(ks[4], (C_OUT,), jnp.float32)
    p['be1'] = 0.1 * jax.random.normal(ks[5], (C_OUT,), jnp.float32)
    p['m1'] = 0.1 * jax.random.normal(ks[6], (C_OUT,), jnp.float32)
    p['v1'] = jax.random.uniform(ks[7], (C_OUT,), jnp.float32, 0.5, 1.5)
    p['g2'] = 1.0 + 0.1 * jax.random.normal(ks[8], (C_OUT,), jnp.float32)
    p['be2'] = 0.1 * jax.random.normal(ks[9], (C_OUT,), jnp.float32)
    p['m2'] = 0.1 * jax.random.normal(ks[10], (C_OUT,), jnp.float32)
    p['v2'] = jax.random.uniform(ks[11], (C_OUT,), jnp.float32, 0.5, 1.5)
    return p


# ----------------- pure-JAX reference (PyTorch structure, NCHW, f32) ---------------
def ref_forward(x, A, p):
    y = jnp.einsum('oc,nctv->notv', p['w1'], x) + p['b1'][None, :, None, None]
    y = y.reshape(N, K, C_OUT, T, V)
    y = jnp.einsum('nkctv,kvw->nctw', y, A)
    y = (y - p['m1'][None, :, None, None]) / jnp.sqrt(p['v1'] + EPS)[None, :, None, None]
    y = y * p['g1'][None, :, None, None] + p['be1'][None, :, None, None]
    y = jnp.maximum(y, 0.0)
    yp = jnp.pad(y, ((0, 0), (0, 0), (PAD, PAD), (0, 0)))
    z = jnp.zeros((N, C_OUT, T, V), jnp.float32)
    for dt in range(KT):
        z = z + jnp.einsum('oi,nitv->notv', p['w2'][:, :, dt], yp[:, :, dt:dt + T, :])
    z = z + p['b2'][None, :, None, None]
    z = (z - p['m2'][None, :, None, None]) / jnp.sqrt(p['v2'] + EPS)[None, :, None, None]
    z = z * p['g2'][None, :, None, None] + p['be2'][None, :, None, None]
    return jnp.maximum(z + x, 0.0)


if __name__ == "__main__":
    key = jax.random.PRNGKey(0)
    kx, ka, kp = jax.random.split(key, 3)
    x = jax.random.normal(kx, (N, C_IN, T, V), jnp.float32)
    A = 0.5 * jax.random.normal(ka, (K, V, V), jnp.float32)
    params = init_params(kp)

    out, A_out = st_gcn_forward(x, A, params)
    out = jax.block_until_ready(out)
    assert out.shape == (N, C_OUT, T, V)

    ref = ref_forward(x, A, params)
    # bf16 weights/activations (f32 accumulation) vs the full-f32 reference: tolerance
    # loosened accordingly (review-sanctioned).
    if not bool(jnp.allclose(out, ref, atol=5e-2, rtol=5e-2)):
        raise AssertionError(
            f"mismatch vs reference, max abs err = {float(jnp.max(jnp.abs(out - ref)))}")
    print("KERNEL_OK")
</pallas_src>

<mosaic_0001>
module attributes {stable_mosaic.version = 11 : i64} {
  func.func @st_gcn_kernel(%arg0: memref<16x256xf32, #tpu.memory_space<vmem>>, %arg1: memref<256x256xbf16, #tpu.memory_space<vmem>>, %arg2: memref<1x256xf32, #tpu.memory_space<vmem>>, %arg3: memref<256x768xbf16, #tpu.memory_space<vmem>>, %arg4: memref<1x256xf32, #tpu.memory_space<vmem>>, %arg5: memref<16x256xf32, #tpu.memory_space<vmem>>) attributes {dimension_semantics = [], scalar_prefetch = 0 : i64, scratch_operands = 0 : i64, tpu.core_type = #tpu.core_type<tc>} {
    %c0 = arith.constant 0 : index
    %c0_0 = arith.constant 0 : index
    %0 = vector.load %arg0[%c0, %c0_0] : memref<16x256xf32, #tpu.memory_space<vmem>>, vector<16x256xf32>
    %1 = arith.truncf %0 : vector<16x256xf32> to vector<16x256xbf16>
    %c0_1 = arith.constant 0 : index
    %c0_2 = arith.constant 0 : index
    %2 = vector.load %arg1[%c0_1, %c0_2] : memref<256x256xbf16, #tpu.memory_space<vmem>>, vector<256x256xbf16>
    %cst = arith.constant dense<0.000000e+00> : vector<16x256xf32>
    %3 = tpu.matmul %1, %2, %cst {dimension_numbers = #tpu.dot_dimension_numbers<[1], [0], [0], [1], [0, 0, 1, 1], [], []>} : vector<16x256xbf16>, vector<256x256xbf16>, vector<16x256xf32> -> vector<16x256xf32>
    %c0_3 = arith.constant 0 : index
    %c0_4 = arith.constant 0 : index
    %4 = vector.load %arg2[%c0_3, %c0_4] : memref<1x256xf32, #tpu.memory_space<vmem>>, vector<1x256xf32>
    %5 = vector.broadcast %4 : vector<1x256xf32> to vector<16x256xf32>
    %6 = arith.addf %3, %5 : vector<16x256xf32>
    %cst_5 = arith.constant 0.000000e+00 : f32
    %7 = vector.broadcast %cst_5 : f32 to vector<16x256xf32>
    %8 = arith.maximumf %6, %7 : vector<16x256xf32>
    %9 = arith.truncf %8 : vector<16x256xf32> to vector<16x256xbf16>
    %c0_6 = arith.constant 0 : index
    %c0_7 = arith.constant 0 : index
    %10 = vector.load %arg3[%c0_6, %c0_7] : memref<256x768xbf16, #tpu.memory_space<vmem>>, vector<256x768xbf16>
    %cst_8 = arith.constant dense<0.000000e+00> : vector<16x768xf32>
    %11 = tpu.matmul %9, %10, %cst_8 {dimension_numbers = #tpu.dot_dimension_numbers<[1], [0], [0], [1], [0, 0, 1, 1], [], []>} : vector<16x256xbf16>, vector<256x768xbf16>, vector<16x768xf32> -> vector<16x768xf32>
    %12 = tpu.iota {dimensions = array<i32: 0>} : vector<16x1xi32>
    %c8_i32 = arith.constant 8 : i32
    %c0_i32 = arith.constant 0 : i32
    %13 = arith.cmpi eq, %c8_i32, %c0_i32 : i32
    %c1_i32 = arith.constant 1 : i32
    %14 = arith.select %13, %c1_i32, %c8_i32 : i32
    %15 = vector.broadcast %14 : i32 to vector<16x1xi32>
    %16 = arith.remsi %12, %15 : vector<16x1xi32>
    %c0_i32_9 = arith.constant 0 : i32
    %17 = vector.broadcast %c0_i32_9 : i32 to vector<16x1xi32>
    %18 = arith.cmpi ne, %16, %17 : vector<16x1xi32>
    %c0_i32_10 = arith.constant 0 : i32
    %19 = vector.broadcast %c0_i32_10 : i32 to vector<16x1xi32>
    %20 = arith.cmpi slt, %16, %19 : vector<16x1xi32>
    %c0_i32_11 = arith.constant 0 : i32
    %21 = arith.cmpi slt, %14, %c0_i32_11 : i32
    %22 = vector.broadcast %21 : i1 to vector<16x1xi1>
    %23 = vector.broadcast %22 : vector<16x1xi1> to vector<16x1xi1>
    %24 = arith.xori %20, %23 : vector<16x1xi1>
    %25 = arith.andi %24, %18 : vector<16x1xi1>
    %26 = vector.broadcast %14 : i32 to vector<16x1xi32>
    %27 = arith.addi %16, %26 : vector<16x1xi32>
    %28 = arith.select %25, %27, %16 : vector<16x1xi1>, vector<16x1xi32>
    %29 = vector.extract_strided_slice %11 {offsets = [0, 256], sizes = [16, 256], strides = [1, 1]} : vector<16x768xf32> to vector<16x256xf32>
    %c0_12 = arith.constant 0 : index
    %c0_13 = arith.constant 0 : index
    %30 = vector.load %arg4[%c0_12, %c0_13] : memref<1x256xf32, #tpu.memory_space<vmem>>, vector<1x256xf32>
    %31 = vector.broadcast %30 : vector<1x256xf32> to vector<16x256xf32>
    %32 = arith.addf %29, %31 : vector<16x256xf32>
    %33 = vector.extract_strided_slice %11 {offsets = [0, 0], sizes = [16, 256], strides = [1, 1]} : vector<16x768xf32> to vector<16x256xf32>
    %c1_i32_14 = arith.constant 1 : i32
    %34 = tpu.dynamic_rotate %33 by %c1_i32_14 dim 0 : vector<16x256xf32>, i32 -> vector<16x256xf32>
    %c-1_i32 = arith.constant -1 : i32
    %35 = vector.broadcast %c-1_i32 : i32 to vector<16x1xi32>
    %36 = arith.addi %28, %35 : vector<16x1xi32>
    %c0_i32_15 = arith.constant 0 : i32
    %37 = vector.broadcast %c0_i32_15 : i32 to vector<16x1xi32>
    %38 = arith.cmpi sge, %36, %37 : vector<16x1xi32>
    %c8_i32_16 = arith.constant 8 : i32
    %39 = vector.broadcast %c8_i32_16 : i32 to vector<16x1xi32>
    %40 = arith.cmpi slt, %36, %39 : vector<16x1xi32>
    %41 = arith.andi %38, %40 : vector<16x1xi1>
    %cst_17 = arith.constant 0.000000e+00 : f32
    %42 = vector.shape_cast %41 : vector<16x1xi1> to vector<16x1xi1>
    %43 = vector.broadcast %42 : vector<16x1xi1> to vector<16x256xi1>
    %44 = vector.broadcast %cst_17 : f32 to vector<16x256xf32>
    %45 = arith.select %43, %34, %44 : vector<16x256xi1>, vector<16x256xf32>
    %46 = arith.addf %32, %45 : vector<16x256xf32>
    %47 = vector.extract_strided_slice %11 {offsets = [0, 512], sizes = [16, 256], strides = [1, 1]} : vector<16x768xf32> to vector<16x256xf32>
    %c15_i32 = arith.constant 15 : i32
    %48 = tpu.dynamic_rotate %47 by %c15_i32 dim 0 : vector<16x256xf32>, i32 -> vector<16x256xf32>
    %c1_i32_18 = arith.constant 1 : i32
    %49 = vector.broadcast %c1_i32_18 : i32 to vector<16x1xi32>
    %50 = arith.addi %28, %49 : vector<16x1xi32>
    %c0_i32_19 = arith.constant 0 : i32
    %51 = vector.broadcast %c0_i32_19 : i32 to vector<16x1xi32>
    %52 = arith.cmpi sge, %50, %51 : vector<16x1xi32>
    %c8_i32_20 = arith.constant 8 : i32
    %53 = vector.broadcast %c8_i32_20 : i32 to vector<16x1xi32>
    %54 = arith.cmpi slt, %50, %53 : vector<16x1xi32>
    %55 = arith.andi %52, %54 : vector<16x1xi1>
    %cst_21 = arith.constant 0.000000e+00 : f32
    %56 = vector.shape_cast %55 : vector<16x1xi1> to vector<16x1xi1>
    %57 = vector.broadcast %56 : vector<16x1xi1> to vector<16x256xi1>
    %58 = vector.broadcast %cst_21 : f32 to vector<16x256xf32>
    %59 = arith.select %57, %48, %58 : vector<16x256xi1>, vector<16x256xf32>
    %60 = arith.addf %46, %59 : vector<16x256xf32>
    %61 = arith.addf %60, %0 : vector<16x256xf32>
    %cst_22 = arith.constant 0.000000e+00 : f32
    %62 = vector.broadcast %cst_22 : f32 to vector<16x256xf32>
    %63 = arith.maximumf %61, %62 : vector<16x256xf32>
    %c0_23 = arith.constant 0 : index
    %c0_24 = arith.constant 0 : index
    %64 = vector.load %arg5[%c0_23, %c0_24] : memref<16x256xf32, #tpu.memory_space<vmem>>, vector<16x256xf32>
    tpu.vector_store %arg5[%c0_23, %c0_24], %63 {strides = array<i32>} : memref<16x256xf32, #tpu.memory_space<vmem>>, vector<16x256xf32>,
    return
  }
}

</mosaic_0001>

<bundles_post_ra>
// kernel: tpu_custom_call.1
= control target key start
LH: loop header
LB: loop body
LE: loop exit
PB: predicated region body
PF: predicated region fallthrough
CT: control target
= control target key end

     0   :  { %10 = vsyncpa [#allocation3], 0  ;;  %s1690_s0 = inlined_call_operand.hbm [shape: f32[16,256], index: 0, kind: input, shape index: {}]   ;;  %s1691_s1 = inlined_call_operand.hbm [shape: bf16[256,256], index: 1, kind: input, shape index: {}]   ;;  %s1692_s2 = inlined_call_operand.vmem [shape: f32[1,256], index: 2, kind: input, shape index: {}]   ;;  %s1693_s3 = inlined_call_operand.hbm [shape: bf16[256,768], index: 3, kind: input, shape index: {}]   ;;  %s1694_s4 = inlined_call_operand.vmem [shape: f32[1,256], index: 4, kind: input, shape index: {}]   ;;  %s1695_s5 = inlined_call_operand.hbm [shape: f32[16,256], index: 5, kind: output, shape index: {}]  }
   0x1   :  { %11 = vsyncpa [#allocation6], 0 }
   0x2   :  { %12 = vsyncpa [#allocation4], 0  ;;  %s1573_s18 = smov [#allocation5]  }
   0x3   :  { %s30_s19 = sshll.u32 %s1573_s18, 4  ;;  %s31_s19 = int_to_ptr.vmem [resolvable:$true] %s30_s19 }
   0x4   :  { %s1495_s20 = scalar_lea.vmem %s31_s19, 4096  ;;  %p1500_p1 = scmp.lt.s32.totalorder %s31_s19, %s31_s19 }
   0x5   :  { %p1496_p0 = scmp.ne.s32.totalorder %s31_s19, %s1495_s20  ;;  %p1501_p2 = scmp.lt.s32.totalorder %s1495_s20, %s1495_s20 }
   0x7   :  { %p1502_p3 = por %p1501_p2, %p1500_p1 }
   0x9   :  { %p1503_p4 = pnand %p1502_p3, %p1496_p0 }
   0xb   :  { %1506 = shalt.err (!%p1503_p4)
}
   0xc   :  { %s1574_s21 = smov 128   ;;  %s1575_s22 = smov 8  }
   0xd   :  { %36 = dma.hbm_to_vmem [thread:$0]  %s1691_s1, 4096, %s31_s19, [#allocation6], %s1574_s21, %s1574_s21, %s1575_s22  }
   0xe   :  { %s1576_s25 = smov [#allocation2]  }
   0xf   :  { %s18_s26 = sshll.u32 %s1576_s25, 4  ;;  %s19_s26 = int_to_ptr.vmem [resolvable:$true] %s18_s26 }
  0x10   :  { %s1515_s27 = scalar_lea.vmem %s19_s26, 512  ;;  %p1520_p6 = scmp.lt.s32.totalorder %s19_s26, %s19_s26 }
  0x11   :  { %p1516_p5 = scmp.ne.s32.totalorder %s19_s26, %s1515_s27  ;;  %p1521_p7 = scmp.lt.s32.totalorder %s1515_s27, %s1515_s27 }
  0x13   :  { %p1522_p8 = por %p1521_p7, %p1520_p6 }
  0x15   :  { %p1523_p9 = pnand %p1522_p8, %p1516_p5 }
  0x17   :  { %1526 = shalt.err (!%p1523_p9)
}
  0x18   :  { %s1577_s28 = smov 256   ;;  %s1578_s29 = smov 16  }
  0x19   :  { %24 = dma.hbm_to_vmem [thread:$0]  %s1690_s0, 512, %s19_s26, [#allocation3], %s1577_s28, %s1577_s28, %s1578_s29  }
  0x1a   :  { %s1579_s1 = smov [#allocation7]  }
  0x1b   :  { %s44_s7 = sshll.u32 %s1579_s1, 4  ;;  %s45_s7 = int_to_ptr.vmem [resolvable:$true] %s44_s7 }
  0x1c   :  { %s1535_s8 = scalar_lea.vmem %s45_s7, 12288  ;;  %p1540_p11 = scmp.lt.s32.totalorder %s45_s7, %s45_s7 }
  0x1d   :  { %p1536_p10 = scmp.ne.s32.totalorder %s45_s7, %s1535_s8  ;;  %p1541_p12 = scmp.lt.s32.totalorder %s1535_s8, %s1535_s8 }
  0x1f   :  { %p1542_p13 = por %p1541_p12, %p1540_p11 }
  0x21   :  { %p1543_p0 = pnand %p1542_p13, %p1536_p10 }
  0x23   :  { %1546 = shalt.err (!%p1543_p0)
}
  0x24   :  { %s1580_s9 = smov 384   ;;  %s1581_s10 = smov 24  }
  0x25   :  { %50 = dma.hbm_to_vmem [thread:$0]  %s1693_s3, 12288, %s45_s7, [#allocation6], %s1580_s9, %s1580_s9, %s1581_s10  }
  0x26   :  { %1567 = dma.done.wait [#allocation3], 512  }
  0x27   :  { %1568 = vsyncadd [#allocation3], 4294966784 }
  0x28   :  { %1569 = dma.done.wait [#allocation6], 16384  }
  0x29   :  { %1570 = vsyncadd [#allocation6], 4294950912  ;;  %v1295_v0 = vld [vmem:[#allocation5 + $0x74] ss:$8 sps:$4 sm:$0xff]   ;;  %v1297_v1 = vld [vmem:[#allocation5 + $0x70] ss:$8 sps:$4 sm:$0xff]  }
  0x2a   :  { %272 = vmatprep.subr.bf16.mxu0 %v1295_v0  ;;  %v1298_v2 = vld [vmem:[#allocation5 + $0x64] ss:$8 sps:$4 sm:$0xff]   ;;  %v1300_v3 = vld [vmem:[#allocation5 + $0x60] ss:$8 sps:$4 sm:$0xff]   ;;  %v1301_v4 = vld [vmem:[#allocation5 + $0x54] ss:$8 sps:$4 sm:$0xff]  }
  0x2b   :  { %273 = vmatpush1.bf16.msra.mxu0 %v1297_v1  ;;  %v1303_v5 = vld [vmem:[#allocation5 + $0x50] ss:$8 sps:$4 sm:$0xff]   ;;  %v1304_v6 = vld [vmem:[#allocation5 + $0x44] ss:$8 sps:$4 sm:$0xff]   ;;  %v1306_v7 = vld [vmem:[#allocation5 + $0x40] ss:$8 sps:$4 sm:$0xff]  }
  0x2c   :  { %274 = vmatprep.subr.bf16.mxu0 %v1298_v2  ;;  %v1307_v8 = vld [vmem:[#allocation5 + $0x34] ss:$8 sps:$4 sm:$0xff]   ;;  %v1309_v9 = vld [vmem:[#allocation5 + $0x30] ss:$8 sps:$4 sm:$0xff]   ;;  %v1310_v10 = vld [vmem:[#allocation5 + $0x24] ss:$8 sps:$4 sm:$0xff]  }
  0x2d   :  { %v1312_v11 = vld [vmem:[#allocation5 + $0x20] ss:$8 sps:$4 sm:$0xff]   ;;  %v1313_v12 = vld [vmem:[#allocation5 + $0x14] ss:$8 sps:$4 sm:$0xff]   ;;  %v1315_v15 = vld [vmem:[#allocation5 + $0x10] ss:$8 sps:$4 sm:$0xff]  }
  0x2e   :  { %v1625_v13 = vld [vmem:[#allocation2 + $0x8] sm:$0xff]  ;;  %v1627_v14 = vld [vmem:[#allocation2 + $0x18] sm:$0xff]  ;;  %v1631_v54 = vld [vmem:[#allocation2] sm:$0xff] }
  0x2f   :  { %275 = vmatpush1.bf16.msra.mxu0 %v1300_v3  ;;  %v67_v16 = vpack.c.bf16 %v1627_v14, %v1625_v13  ;;  %v1343_v17 = vld [vmem:[#allocation7 + $0x154] ss:$24 sps:$4 sm:$0xff]   ;;  %v1345_v18 = vld [vmem:[#allocation7 + $0x150] ss:$24 sps:$4 sm:$0xff]   ;;  %v1349_v20 = vld [vmem:[#allocation7 + $0x124] ss:$24 sps:$4 sm:$0xff]  }
  0x30   :  { %276 = vmatprep.subr.bf16.mxu0 %v1301_v4  ;;  %v1316_v19 = vld [vmem:[#allocation5 + $0x4] ss:$8 sps:$4 sm:$0xff]   ;;  %897 = vmatprep.subr.bf16.mxu1 %v1343_v17  ;;  %v1351_v21 = vld [vmem:[#allocation7 + $0x120] ss:$24 sps:$4 sm:$0xff]   ;;  %v1319_v23 = vld [vmem:[#allocation5 + $0xf4] ss:$8 sps:$4 sm:$0xff]  }
  0x31   :  { %304 = vmatprep.mubr.bf16.mxu0 %v67_v16  ;;  %898 = vmatpush1.bf16.msra.mxu1 %v1345_v18  ;;  %v1318_v22 = vld [vmem:[#allocation5] ss:$8 sps:$4 sm:$0xff]   ;;  %v1355_v24 = vld [vmem:[#allocation7 + $0xf4] ss:$24 sps:$4 sm:$0xff]   ;;  %v1321_v26 = vld [vmem:[#allocation5 + $0xf0] ss:$8 sps:$4 sm:$0xff]  }
  0x32   :  { %899 = vmatprep.subr.bf16.mxu1 %v1349_v20  ;;  %v1357_v25 = vld [vmem:[#allocation7 + $0xf0] ss:$24 sps:$4 sm:$0xff]   ;;  %v1361_v27 = vld [vmem:[#allocation7 + $0xc4] ss:$24 sps:$4 sm:$0xff]   ;;  %v1363_v29 = vld [vmem:[#allocation7 + $0xc0] ss:$24 sps:$4 sm:$0xff]  }
  0x33   :  { %277 = vmatpush1.bf16.msra.mxu0 %v1303_v5  ;;  %v1322_v28 = vld [vmem:[#allocation5 + $0xe4] ss:$8 sps:$4 sm:$0xff]   ;;  %v1324_v30 = vld [vmem:[#allocation5 + $0xe0] ss:$8 sps:$4 sm:$0xff]   ;;  %v1325_v32 = vld [vmem:[#allocation5 + $0xd4] ss:$8 sps:$4 sm:$0xff]  }
  0x34   :  { %278 = vmatprep.subr.bf16.mxu0 %v1304_v6  ;;  %v1367_v31 = vld [vmem:[#allocation7 + $0x94] ss:$24 sps:$4 sm:$0xff]   ;;  %v1369_v33 = vld [vmem:[#allocation7 + $0x90] ss:$24 sps:$4 sm:$0xff]   ;;  %v1373_v35 = vld [vmem:[#allocation7 + $0x64] ss:$24 sps:$4 sm:$0xff]  }
  0x35   :  { %900 = vmatpush1.bf16.msra.mxu1 %v1351_v21  ;;  %v1327_v34 = vld [vmem:[#allocation5 + $0xd0] ss:$8 sps:$4 sm:$0xff]   ;;  %v1328_v36 = vld [vmem:[#allocation5 + $0xc4] ss:$8 sps:$4 sm:$0xff]   ;;  %v1330_v38 = vld [vmem:[#allocation5 + $0xc0] ss:$8 sps:$4 sm:$0xff]  }
  0x36   :  { %901 = vmatprep.subr.bf16.mxu1 %v1355_v24  ;;  %v1375_v37 = vld [vmem:[#allocation7 + $0x60] ss:$24 sps:$4 sm:$0xff]   ;;  %v1379_v39 = vld [vmem:[#allocation7 + $0x34] ss:$24 sps:$4 sm:$0xff]   ;;  %v1381_v41 = vld [vmem:[#allocation7 + $0x30] ss:$24 sps:$4 sm:$0xff]  }
  0x37   :  { %279 = vmatpush1.bf16.msra.mxu0 %v1306_v7  ;;  %v1331_v40 = vld [vmem:[#allocation5 + $0xb4] ss:$8 sps:$4 sm:$0xff]   ;;  %v1333_v42 = vld [vmem:[#allocation5 + $0xb0] ss:$8 sps:$4 sm:$0xff]   ;;  %v1334_v44 = vld [vmem:[#allocation5 + $0xa4] ss:$8 sps:$4 sm:$0xff]  }
  0x38   :  { %280 = vmatprep.subr.bf16.mxu0 %v1307_v8  ;;  %v1385_v43 = vld [vmem:[#allocation7 + $0x4] ss:$24 sps:$4 sm:$0xff]   ;;  %v1387_v45 = vld [vmem:[#allocation7] ss:$24 sps:$4 sm:$0xff]   ;;  %v1391_v47 = vld [vmem:[#allocation7 + $0x2d4] ss:$24 sps:$4 sm:$0xff]  }
  0x39   :  { %902 = vmatpush1.bf16.msra.mxu1 %v1357_v25  ;;  %v1336_v46 = vld [vmem:[#allocation5 + $0xa0] ss:$8 sps:$4 sm:$0xff]   ;;  %v1337_v48 = vld [vmem:[#allocation5 + $0x94] ss:$8 sps:$4 sm:$0xff]   ;;  %v1339_v50 = vld [vmem:[#allocation5 + $0x90] ss:$8 sps:$4 sm:$0xff]  }
  0x3a   :  { %903 = vmatprep.subr.bf16.mxu1 %v1361_v27  ;;  %v1393_v49 = vld [vmem:[#allocation7 + $0x2d0] ss:$24 sps:$4 sm:$0xff]   ;;  %v1397_v51 = vld [vmem:[#allocation7 + $0x2a4] ss:$24 sps:$4 sm:$0xff]   ;;  %v1399_v56 = vld [vmem:[#allocation7 + $0x2a0] ss:$24 sps:$4 sm:$0xff]  }
  0x3b   :  { %281 = vmatpush1.bf16.msra.mxu0 %v1309_v9  ;;  %v1340_v52 = vld [vmem:[#allocation5 + $0x84] ss:$8 sps:$4 sm:$0xff]   ;;  %v1342_v53 = vld [vmem:[#allocation5 + $0x80] ss:$8 sps:$4 sm:$0xff]   ;;  %v1633_v55 = vld [vmem:[#allocation2 + $0x10] sm:$0xff] }
  0x3c   :  { %282 = vmatprep.subr.bf16.mxu0 %v1310_v10  ;;  %v1403_v57 = vld [vmem:[#allocation7 + $0x274] ss:$24 sps:$4 sm:$0xff]   ;;  %v1405_v59 = vld [vmem:[#allocation7 + $0x270] ss:$24 sps:$4 sm:$0xff]   ;;  %v1409_v61 = vld [vmem:[#allocation7 + $0x244] ss:$24 sps:$4 sm:$0xff]   ;;  %v66_v62 = vpack.c.bf16 %v1633_v55, %v1631_v54 }
  0x3d   :  { %904 = vmatpush1.bf16.msra.mxu1 %v1363_v29  ;;  %v1348_v58 = vld [vmem:[#allocation7 + $0x15c] ss:$24 sps:$4 sm:$0xff]   ;;  %v1346_v60 = vld [vmem:[#allocation7 + $0x158] ss:$24 sps:$4 sm:$0xff]   ;;  %v1354_v63 = vld [vmem:[#allocation7 + $0x12c] ss:$24 sps:$4 sm:$0xff]  }
  0x3e   :  { %905 = vmatprep.subr.bf16.mxu1 %v1367_v31  ;;  %v1411_v0 = vld [vmem:[#allocation7 + $0x240] ss:$24 sps:$4 sm:$0xff]   ;;  %v1415_v2 = vld [vmem:[#allocation7 + $0x214] ss:$24 sps:$4 sm:$0xff]   ;;  %v1417_v4 = vld [vmem:[#allocation7 + $0x210] ss:$24 sps:$4 sm:$0xff]  }
  0x3f   :  { %283 = vmatpush1.bf16.msra.mxu0 %v1312_v11  ;;  %v1352_v1 = vld [vmem:[#allocation7 + $0x128] ss:$24 sps:$4 sm:$0xff]   ;;  %v1360_v3 = vld [vmem:[#allocation7 + $0xfc] ss:$24 sps:$4 sm:$0xff]   ;;  %v1358_v5 = vld [vmem:[#allocation7 + $0xf8] ss:$24 sps:$4 sm:$0xff]  }
  0x40   :  { %284 = vmatprep.subr.bf16.mxu0 %v1313_v12  ;;  %v1366_v6 = vld [vmem:[#allocation7 + $0xcc] ss:$24 sps:$4 sm:$0xff]   ;;  %v1364_v7 = vld [vmem:[#allocation7 + $0xc8] ss:$24 sps:$4 sm:$0xff]   ;;  %v1372_v8 = vld [vmem:[#allocation7 + $0x9c] ss:$24 sps:$4 sm:$0xff]  }
  0x41   :  { %906 = vmatpush1.bf16.msra.mxu1 %v1369_v33  ;;  %v1370_v9 = vld [vmem:[#allocation7 + $0x98] ss:$24 sps:$4 sm:$0xff]   ;;  %v1378_v10 = vld [vmem:[#allocation7 + $0x6c] ss:$24 sps:$4 sm:$0xff]   ;;  %v1376_v11 = vld [vmem:[#allocation7 + $0x68] ss:$24 sps:$4 sm:$0xff]  }
  0x42   :  { %907 = vmatprep.subr.bf16.mxu1 %v1373_v35  ;;  %v1384_v12 = vld [vmem:[#allocation7 + $0x3c] ss:$24 sps:$4 sm:$0xff]   ;;  %v1390_v16 = vld [vmem:[#allocation7 + $0xc] ss:$24 sps:$4 sm:$0xff]   ;;  %v1388_v17 = vld [vmem:[#allocation7 + $0x8] ss:$24 sps:$4 sm:$0xff]  }
  0x43   :  { %285 = vmatpush1.bf16.msra.mxu0 %v1315_v15  ;;  %v1382_v15 = vld [vmem:[#allocation7 + $0x38] ss:$24 sps:$4 sm:$0xff]   ;;  %v1396_v18 = vld [vmem:[#allocation7 + $0x2dc] ss:$24 sps:$4 sm:$0xff]   ;;  %v1402_v20 = vld [vmem:[#allocation7 + $0x2ac] ss:$24 sps:$4 sm:$0xff]  }
  0x44   :  { %286 = vmatprep.subr.bf16.mxu0 %v1316_v19  ;;  %v1394_v19 = vld [vmem:[#allocation7 + $0x2d8] ss:$24 sps:$4 sm:$0xff]   ;;  %v1400_v21 = vld [vmem:[#allocation7 + $0x2a8] ss:$24 sps:$4 sm:$0xff]   ;;  %v1414_v24 = vld [vmem:[#allocation7 + $0x24c] ss:$24 sps:$4 sm:$0xff]  }
  0x45   :  { %908 = vmatpush1.bf16.msra.mxu1 %v1375_v37  ;;  %v1412_v25 = vld [vmem:[#allocation7 + $0x248] ss:$24 sps:$4 sm:$0xff]   ;;  %v1418_v27 = vld [vmem:[#allocation7 + $0x218] ss:$24 sps:$4 sm:$0xff]  }
  0x46   :  { %909 = vmatprep.subr.bf16.mxu1 %v1379_v39  ;;  %v1423_v29 = vld [vmem:[#allocation7 + $0x1e0] ss:$24 sps:$4 sm:$0xff]   ;;  %v1429_v33 = vld [vmem:[#allocation7 + $0x1b0] ss:$24 sps:$4 sm:$0xff]  }
  0x47   :  { %287 = vmatpush1.bf16.msra.mxu0 %v1318_v22  ;;  %v1408_v22 = vld [vmem:[#allocation7 + $0x27c] ss:$24 sps:$4 sm:$0xff]   ;;  %v1424_v31 = vld [vmem:[#allocation7 + $0x1e8] ss:$24 sps:$4 sm:$0xff]   ;;  %v1430_v35 = vld [vmem:[#allocation7 + $0x1b8] ss:$24 sps:$4 sm:$0xff]  }
  0x48   :  { %288 = vmatprep.subr.bf16.mxu0 %v1319_v23  ;;  %v1406_v23 = vld [vmem:[#allocation7 + $0x278] ss:$24 sps:$4 sm:$0xff]   ;;  %v1436_v39 = vld [vmem:[#allocation7 + $0x188] ss:$24 sps:$4 sm:$0xff]  }
  0x49   :  { %910 = vmatpush1.bf16.msra.mxu1 %v1381_v41  ;;  %v1435_v37 = vld [vmem:[#allocation7 + $0x180] ss:$24 sps:$4 sm:$0xff]   ;;  %v102_v41 = vlaneseq }
  0x4a   :  { %911 = vmatprep.subr.bf16.mxu1 %v1385_v43 }
  0x4b   :  { %289 = vmatpush2.bf16.msra.mxu0 %v1321_v26  ;;  %v1420_v26 = vld [vmem:[#allocation7 + $0x21c] ss:$24 sps:$4 sm:$0xff]  }
  0x4c   :  { %290 = vmatprep.subr.bf16.mxu0 %v1322_v28  ;;  %v1421_v28 = vld [vmem:[#allocation7 + $0x1e4] ss:$24 sps:$4 sm:$0xff]  }
  0x4d   :  { %912 = vmatpush1.bf16.msra.mxu1 %v1387_v45  ;;  %v100_v45 = vld [vmem:[%s1692_s2] sm:$0x3] }
  0x4e   :  { %913 = vmatprep.subr.bf16.mxu1 %v1391_v47 }
  0x4f   :  { %291 = vmatpush2.bf16.msra.mxu0 %v1324_v30  ;;  %v1426_v30 = vld [vmem:[#allocation7 + $0x1ec] ss:$24 sps:$4 sm:$0xff]  }
  0x50   :  { %292 = vmatprep.subr.bf16.mxu0 %v1325_v32  ;;  %v1427_v32 = vld [vmem:[#allocation7 + $0x1b4] ss:$24 sps:$4 sm:$0xff]  }
  0x51   :  { %914 = vmatpush2.bf16.msra.mxu1 %v1393_v49 }
  0x52   :  { %915 = vmatprep.subr.bf16.mxu1 %v1397_v51 }
  0x53   :  { %293 = vmatpush2.bf16.msra.mxu0 %v1327_v34  ;;  %v1432_v34 = vld [vmem:[#allocation7 + $0x1bc] ss:$24 sps:$4 sm:$0xff]  }
  0x54   :  { %294 = vmatprep.subr.bf16.mxu0 %v1328_v36  ;;  %v1433_v36 = vld [vmem:[#allocation7 + $0x184] ss:$24 sps:$4 sm:$0xff]  }
  0x55   :  { %916 = vmatpush2.bf16.msra.mxu1 %v1399_v56 }
  0x56   :  { %917 = vmatprep.subr.bf16.mxu1 %v1403_v57 }
  0x57   :  { %295 = vmatpush2.bf16.msra.mxu0 %v1330_v38  ;;  %v1438_v38 = vld [vmem:[#allocation7 + $0x18c] ss:$24 sps:$4 sm:$0xff]  }
  0x58   :  { %296 = vmatprep.subr.bf16.mxu0 %v1331_v40  ;;  %v1441_v40 = vld [vmem:[#allocation7 + $0x164] ss:$24 sps:$4 sm:$0xff]  }
  0x59   :  { %918 = vmatpush2.bf16.msra.mxu1 %v1405_v59 }
  0x5a   :  { %919 = vmatprep.subr.bf16.mxu1 %v1409_v61 }
  0x5b   :  { %297 = vmatpush2.bf16.msra.mxu0 %v1333_v42  ;;  %v1637_v42 = vshrl.u32 %v102_v41, 7 }
  0x5c   :  { %298 = vmatprep.subr.bf16.mxu0 %v1334_v44 }
  0x5d   :  { %920 = vmatpush2.bf16.msra.mxu1 %v1411_v0  ;;  %v108_v43 = vsub.s32 1, %v1637_v42  ;;  %v104_v44 = vsub.s32 0, %v1637_v42  ;;  %vm1073_vm0 = vcmp.lt.s32.totalorder %v1637_v42, 1  ;;  %vm1102_vm3 = vcmp.lt.s32.totalorder %v1637_v42, 7 }
  0x5e   :  { %921 = vmatprep.subr.bf16.mxu1 %v1415_v2  ;;  %v1442_v2 = vld [vmem:[#allocation7 + $0x130] ss:$24 sps:$4 sm:$0xff]  }
  0x5f   :  { %299 = vmatpush2.bf16.msra.mxu0 %v1336_v46  ;;  %v109_v47 = vrot.slane %v100_v45, %v108_v43 }
  0x60   :  { %300 = vmatprep.subr.bf16.mxu0 %v1337_v48  ;;  %v105_v48 = vrot.slane %v100_v45, %v104_v44 }
  0x61   :  { %922 = vmatpush2.bf16.msra.mxu1 %v1417_v4  ;;  %v1445_v4 = vld [vmem:[#allocation7 + $0x100] ss:$24 sps:$4 sm:$0xff]  }
  0x62   :  { %923 = vmatprep.subr.bf16.mxu1 %v1421_v28  ;;  %v1478_v28 = vld [vmem:[#allocation7 + $0x1f0] ss:$24 sps:$4 sm:$0xff]  }
  0x63   :  { %301 = vmatpush2.bf16.msra.mxu0 %v1339_v50 }
  0x64   :  { %302 = vmatprep.subr.bf16.mxu0 %v1340_v52 }
  0x65   :  { %924 = vmatpush2.bf16.msra.mxu1 %v1423_v29  ;;  %v1483_v29 = vld [vmem:[#allocation7 + $0x1c4] ss:$24 sps:$4 sm:$0xff]  }
  0x66   :  { %925 = vmatprep.subr.bf16.mxu1 %v1427_v32  ;;  %v1484_v32 = vld [vmem:[#allocation7 + $0x190] ss:$24 sps:$4 sm:$0xff]  }
  0x67   :  { %303 = vmatpush2.bf16.msra.mxu0 %v1342_v53 }
  0x68   :  { %940 = vmatprep.subr.bf16.mxu0 %v1348_v58 }
  0x69   :  { %926 = vmatpush2.bf16.msra.mxu1 %v1429_v33 }
  0x6a   :  { %305 = vmatmul.mubr.bf16.vlgmr.msra.gmra.mxu0 %v66_v62  ;;  %927 = vmatprep.subr.bf16.mxu1 %v1433_v36 }
  0x6b   :  { %941 = vmatpush1.bf16.msra.mxu0 %v1346_v60 }
  0x6c   :  { %942 = vmatprep.subr.bf16.mxu0 %v1354_v63  ;;  %v1439_v63 = vld [vmem:[#allocation7 + $0x160] ss:$24 sps:$4 sm:$0xff]  }
  0x6d   :  { %928 = vmatpush2.bf16.msra.mxu1 %v1435_v37 }
  0x6e   :  { %983 = vmatprep.subr.bf16.mxu1 %v1441_v40 }
  0x6f   :  { %943 = vmatpush1.bf16.msra.mxu0 %v1352_v1  ;;  %v1444_v1 = vld [vmem:[#allocation7 + $0x134] ss:$24 sps:$4 sm:$0xff]  }
  0x70   :  { %944 = vmatprep.subr.bf16.mxu0 %v1360_v3  ;;  %v1447_v3 = vld [vmem:[#allocation7 + $0x104] ss:$24 sps:$4 sm:$0xff]  }
  0x73   :  { %945 = vmatpush1.bf16.msra.mxu0 %v1358_v5  ;;  %v1450_v5 = vld [vmem:[#allocation7 + $0xd4] ss:$24 sps:$4 sm:$0xff]  }
  0x74   :  { %946 = vmatprep.subr.bf16.mxu0 %v1366_v6  ;;  %v1448_v6 = vld [vmem:[#allocation7 + $0xd0] ss:$24 sps:$4 sm:$0xff]  }
  0x77   :  { %947 = vmatpush1.bf16.msra.mxu0 %v1364_v7  ;;  %v1453_v7 = vld [vmem:[#allocation7 + $0xa4] ss:$24 sps:$4 sm:$0xff]  }
  0x78   :  { %948 = vmatprep.subr.bf16.mxu0 %v1372_v8  ;;  %v1451_v8 = vld [vmem:[#allocation7 + $0xa0] ss:$24 sps:$4 sm:$0xff]  }
  0x7b   :  { %949 = vmatpush1.bf16.msra.mxu0 %v1370_v9  ;;  %v1456_v9 = vld [vmem:[#allocation7 + $0x74] ss:$24 sps:$4 sm:$0xff]  }
  0x7c   :  { %950 = vmatprep.subr.bf16.mxu0 %v1378_v10  ;;  %v1454_v10 = vld [vmem:[#allocation7 + $0x70] ss:$24 sps:$4 sm:$0xff]  }
  0x7f   :  { %951 = vmatpush1.bf16.msra.mxu0 %v1376_v11  ;;  %v1459_v11 = vld [vmem:[#allocation7 + $0x44] ss:$24 sps:$4 sm:$0xff]  }
  0x80   :  { %952 = vmatprep.subr.bf16.mxu0 %v1384_v12  ;;  %v1457_v12 = vld [vmem:[#allocation7 + $0x40] ss:$24 sps:$4 sm:$0xff]  }
  0x83   :  { %953 = vmatpush1.bf16.msra.mxu0 %v1382_v15  ;;  %v1462_v15 = vld [vmem:[#allocation7 + $0x14] ss:$24 sps:$4 sm:$0xff]  }
  0x84   :  { %954 = vmatprep.subr.bf16.mxu0 %v1390_v16  ;;  %v1460_v16 = vld [vmem:[#allocation7 + $0x10] ss:$24 sps:$4 sm:$0xff]  }
  0x87   :  { %955 = vmatpush1.bf16.msra.mxu0 %v1388_v17  ;;  %v1465_v17 = vld [vmem:[#allocation7 + $0x2e4] ss:$24 sps:$4 sm:$0xff]  }
  0x88   :  { %956 = vmatprep.subr.bf16.mxu0 %v1396_v18  ;;  %v1463_v18 = vld [vmem:[#allocation7 + $0x2e0] ss:$24 sps:$4 sm:$0xff]  }
  0x8b   :  { %957 = vmatpush2.bf16.msra.mxu0 %v1394_v19  ;;  %v1468_v19 = vld [vmem:[#allocation7 + $0x2b4] ss:$24 sps:$4 sm:$0xff]  }
  0x8c   :  { %958 = vmatprep.subr.bf16.mxu0 %v1402_v20  ;;  %v1466_v20 = vld [vmem:[#allocation7 + $0x2b0] ss:$24 sps:$4 sm:$0xff]  }
  0x8f   :  { %959 = vmatpush2.bf16.msra.mxu0 %v1400_v21  ;;  %v1471_v21 = vld [vmem:[#allocation7 + $0x284] ss:$24 sps:$4 sm:$0xff]  }
  0x90   :  { %960 = vmatprep.subr.bf16.mxu0 %v1408_v22  ;;  %v1469_v22 = vld [vmem:[#allocation7 + $0x280] ss:$24 sps:$4 sm:$0xff]  }
  0x93   :  { %961 = vmatpush2.bf16.msra.mxu0 %v1406_v23  ;;  %v1474_v23 = vld [vmem:[#allocation7 + $0x254] ss:$24 sps:$4 sm:$0xff]  }
  0x94   :  { %962 = vmatprep.subr.bf16.mxu0 %v1414_v24  ;;  %v1472_v24 = vld [vmem:[#allocation7 + $0x250] ss:$24 sps:$4 sm:$0xff]  }
  0x97   :  { %963 = vmatpush2.bf16.msra.mxu0 %v1412_v25  ;;  %v1477_v25 = vld [vmem:[#allocation7 + $0x224] ss:$24 sps:$4 sm:$0xff]  }
  0x98   :  { %964 = vmatprep.subr.bf16.mxu0 %v1420_v26  ;;  %v1475_v26 = vld [vmem:[#allocation7 + $0x220] ss:$24 sps:$4 sm:$0xff]  }
  0x9b   :  { %965 = vmatpush2.bf16.msra.mxu0 %v1418_v27  ;;  %v1480_v27 = vld [vmem:[#allocation7 + $0x1f4] ss:$24 sps:$4 sm:$0xff]  }
  0x9c   :  { %966 = vmatprep.subr.bf16.mxu0 %v1426_v30  ;;  %v1481_v30 = vld [vmem:[#allocation7 + $0x1c0] ss:$24 sps:$4 sm:$0xff]  }
  0x9f   :  { %967 = vmatpush2.bf16.msra.mxu0 %v1424_v31  ;;  %v1486_v31 = vld [vmem:[#allocation7 + $0x194] ss:$24 sps:$4 sm:$0xff]  }
  0xa0   :  { %968 = vmatprep.subr.bf16.mxu0 %v1432_v34 }
  0xa3   :  { %969 = vmatpush2.bf16.msra.mxu0 %v1430_v35  ;;  %v1028_v35 = vadd.s32 8, %v1637_v42 }
  0xa4   :  { %970 = vmatprep.subr.bf16.mxu0 %v1438_v38  ;;  %v1033_v38 = vand.u32 7, %v1637_v42 }
  0xa6   :  { %v1078_v41 = vadd.s32 4294967295, %v1033_v38 }
  0xa7   :  { %971 = vmatpush2.bf16.msra.mxu0 %v1436_v39  ;;  %v1040_v39 = vand.u32 7, %v1028_v35 }
  0xa8   :  { %vm1080_vm1 = vcmp.ge.s32.totalorder %v1078_v41, 0 }
  0xa9   :  { %v1079_v45 = vadd.s32 4294967295, %v1040_v39 }
  0xab   :  { %vm1081_vm2 = vcmp.ge.s32.totalorder %v1079_v45, 0 }
 0x12a   :  { %v306_v46 = vpop.f32.mrf.mxu0 }
 0x12b   :  { %v307_v53 = vadd.f32 %v306_v46, %v105_v48 }
 0x12c   :  { %v308_v49 = vpop.f32.mrf.mxu0 }
 0x12d   :  { %v309_v51 = vadd.f32 %v308_v49, %v109_v47  ;;  %v315_v61 = vmax.f32 %v307_v53, 0.0  ;;  %v1107_v53 = vadd.s32 1, %v1033_v38 }
 0x12e   :  { %v310_v50 = vpop.f32.mrf.mxu0 }
 0x12f   :  { %v311_v52 = vadd.f32 %v310_v50, %v105_v48  ;;  %v316_v59 = vmax.f32 %v309_v51, 0.0  ;;  %vm1111_vm4 = vcmp.lt.s32.totalorder %v1107_v53, 8 }
 0x130   :  { %v312_v56 = vpop.f32.mrf.mxu0 }
 0x131   :  { %v313_v57 = vadd.f32 %v312_v56, %v109_v47  ;;  %v317_v58 = vmax.f32 %v311_v52, 0.0  ;;  %v1053_v47 = vld [vmem:[%s1694_s4] sm:$0x3]  ;;  %s1582_s4 = smov [#allocation8]  }
 0x132   :  { %v1058_v51 = vrot.slane %v1053_v47, %v104_v44  ;;  %s1144_s14 = sshll.u32 %s1582_s4, 4  ;;  %s1145_s14 = int_to_ptr.vmem [resolvable:$true] %s1144_s14 }
 0x133   :  { %v318_v60 = vmax.f32 %v313_v57, 0.0  ;;  %v1648_v0 = vpack.c.bf16 %v317_v58, %v315_v61  ;;  %v1062_v61 = vrot.slane %v1053_v47, %v108_v43  ;;  %s1547_s15 = scalar_lea.vmem %s1145_s14, 512  ;;  %p1552_p2 = scmp.lt.s32.totalorder %s1145_s14, %s1145_s14 }
 0x134   :  { %p1548_p1 = scmp.ne.s32.totalorder %s1145_s14, %s1547_s15  ;;  %p1553_p3 = scmp.lt.s32.totalorder %s1547_s15, %s1547_s15 }
 0x135   :  { %v320_v62 = vpack.c.bf16 %v318_v60, %v316_v59  ;;  %v1108_v60 = vadd.s32 1, %v1040_v39 }
 0x136   :  { %p1554_p4 = por %p1553_p3, %p1552_p2 }
 0x137   :  { %929 = vmatprep.mubr.bf16.mxu1 %v320_v62  ;;  %972 = vmatprep.mubr.bf16.mxu0 %v320_v62  ;;  %vm1112_vm5 = vcmp.lt.s32.totalorder %v1108_v60, 8 }
 0x138   :  { %930 = vmatmul.mubr.bf16.vlgmr.msra.gmra.mxu1 %v1648_v0  ;;  %973 = vmatmul.mubr.bf16.vlgmr.msra.gmra.mxu0 %v1648_v0  ;;  %p1555_p5 = pnand %p1554_p4, %p1548_p1 }
 0x139   :  { %984 = vmatpush1.bf16.msra.mxu1 %v1439_v63  ;;  %1015 = vmatprep.mubr.bf16.mxu1 %v320_v62 }
 0x13a   :  { %985 = vmatprep.subr.bf16.mxu1 %v1444_v1 }
 0x13d   :  { %986 = vmatpush1.bf16.msra.mxu1 %v1442_v2 }
 0x13e   :  { %987 = vmatprep.subr.bf16.mxu1 %v1447_v3 }
 0x141   :  { %988 = vmatpush1.bf16.msra.mxu1 %v1445_v4 }
 0x142   :  { %989 = vmatprep.subr.bf16.mxu1 %v1450_v5 }
 0x145   :  { %990 = vmatpush1.bf16.msra.mxu1 %v1448_v6 }
 0x146   :  { %991 = vmatprep.subr.bf16.mxu1 %v1453_v7 }
 0x149   :  { %992 = vmatpush1.bf16.msra.mxu1 %v1451_v8 }
 0x14a   :  { %993 = vmatprep.subr.bf16.mxu1 %v1456_v9 }
 0x14d   :  { %994 = vmatpush1.bf16.msra.mxu1 %v1454_v10 }
 0x14e   :  { %995 = vmatprep.subr.bf16.mxu1 %v1459_v11 }
 0x151   :  { %996 = vmatpush1.bf16.msra.mxu1 %v1457_v12 }
 0x152   :  { %997 = vmatprep.subr.bf16.mxu1 %v1462_v15 }
 0x155   :  { %998 = vmatpush1.bf16.msra.mxu1 %v1460_v16 }
 0x156   :  { %999 = vmatprep.subr.bf16.mxu1 %v1465_v17 }
 0x159   :  { %1000 = vmatpush2.bf16.msra.mxu1 %v1463_v18 }
 0x15a   :  { %1001 = vmatprep.subr.bf16.mxu1 %v1468_v19 }
 0x15d   :  { %1002 = vmatpush2.bf16.msra.mxu1 %v1466_v20 }
 0x15e   :  { %1003 = vmatprep.subr.bf16.mxu1 %v1471_v21 }
 0x161   :  { %1004 = vmatpush2.bf16.msra.mxu1 %v1469_v22 }
 0x162   :  { %1005 = vmatprep.subr.bf16.mxu1 %v1474_v23 }
 0x165   :  { %1006 = vmatpush2.bf16.msra.mxu1 %v1472_v24 }
 0x166   :  { %1007 = vmatprep.subr.bf16.mxu1 %v1477_v25 }
 0x169   :  { %1008 = vmatpush2.bf16.msra.mxu1 %v1475_v26 }
 0x16a   :  { %1009 = vmatprep.subr.bf16.mxu1 %v1480_v27 }
 0x16d   :  { %1010 = vmatpush2.bf16.msra.mxu1 %v1478_v28 }
 0x16e   :  { %1011 = vmatprep.subr.bf16.mxu1 %v1483_v29 }
 0x171   :  { %1012 = vmatpush2.bf16.msra.mxu1 %v1481_v30 }
 0x172   :  { %1013 = vmatprep.subr.bf16.mxu1 %v1486_v31 }
 0x175   :  { %1014 = vmatpush2.bf16.msra.mxu1 %v1484_v32 }
 0x178   :  { %1016 = vmatmul.mubr.bf16.vlgmr.msra.gmra.mxu1 %v1648_v0 }
 0x1f8   :  { %v931_v33 = vpop.f32.mrf.mxu1  ;;  %v974_v36 = vpop.f32.mrf.mxu0 }
 0x1f9   :  { %v1069_v49 = vrot.slane %v931_v33, 7  ;;  %v1065_v3 = vadd.f32 %v1058_v51, %v974_v36 }
 0x1fa   :  { %v933_v34 = vpop.f32.mrf.mxu1  ;;  %v976_v40 = vpop.f32.mrf.mxu0 }
 0x1fb   :  { %v1070_v56 = vrot.slane %v933_v34, 7  ;;  %v1066_v9 = vadd.f32 %v1062_v61, %v976_v40 }
 0x1fc   :  { %v935_v37 = vpop.f32.mrf.mxu1  ;;  %v978_v52 = vpop.f32.mrf.mxu0 }
 0x1fd   :  { %v1071_v48 = vrot.slane %v935_v37, 7  ;;  %v1067_v4 = vadd.f32 %v1058_v51, %v978_v52 }
 0x1fe   :  { %v937_v46 = vpop.f32.mrf.mxu1  ;;  %v980_v44 = vpop.f32.mrf.mxu0 }
 0x1ff   :  { %v1072_v50 = vrot.slane %v937_v46, 7  ;;  %v1076_v57 = vsel %vm1073_vm0, %v1071_v48, %v1069_v49  ;;  %v1074_v58 = vsel %vm1073_vm0, %v1069_v49, %v1071_v48  ;;  %v1068_v12 = vadd.f32 %v1062_v61, %v980_v44 }
 0x200   :  { %v1090_v1 = vsel %vm1080_vm1, %v1076_v57, 0.0  ;;  %v1092_v2 = vsel %vm1081_vm2, %v1074_v58, 0.0 }
 0x201   :  { %v1077_v62 = vsel %vm1073_vm0, %v1072_v50, %v1070_v56  ;;  %v1075_v63 = vsel %vm1073_vm0, %v1070_v56, %v1072_v50  ;;  %v1094_v10 = vadd.f32 %v1090_v1, %v1065_v3  ;;  %v1096_v11 = vadd.f32 %v1092_v2, %v1067_v4 }
 0x202   :  { %v1091_v6 = vsel %vm1080_vm1, %v1077_v62, 0.0  ;;  %v1093_v7 = vsel %vm1081_vm2, %v1075_v63, 0.0 }
 0x203   :  { %v1095_v20 = vadd.f32 %v1091_v6, %v1066_v9  ;;  %v1097_v21 = vadd.f32 %v1093_v7, %v1068_v12 }
 0x238   :  { %v1017_v59 = vpop.f32.mrf.mxu1 }
 0x239   :  { %v1098_v43 = vrot.slane %v1017_v59, 1 }
 0x23a   :  { %v1019_v0 = vpop.f32.mrf.mxu1 }
 0x23b   :  { %v1099_v16 = vrot.slane %v1019_v0, 1 }
 0x23c   :  { %v1021_v5 = vpop.f32.mrf.mxu1 }
 0x23d   :  { %v1100_v8 = vrot.slane %v1021_v5, 1 }
 0x23e   :  { %v1023_v15 = vpop.f32.mrf.mxu1 }
 0x23f   :  { %v1103_v17 = vsel %vm1102_vm3, %v1098_v43, %v1100_v8  ;;  %v1105_v18 = vsel %vm1102_vm3, %v1100_v8, %v1098_v43  ;;  %v1101_v19 = vrot.slane %v1023_v15, 1 }
 0x240   :  { %v1119_v22 = vsel %vm1111_vm4, %v1103_v17, 0.0  ;;  %v1121_v23 = vsel %vm1112_vm5, %v1105_v18, 0.0 }
 0x241   :  { %v1123_v24 = vadd.f32 %v1119_v22, %v1094_v10  ;;  %v1125_v25 = vadd.f32 %v1121_v23, %v1096_v11  ;;  %v1104_v26 = vsel %vm1102_vm3, %v1099_v16, %v1101_v19  ;;  %v1106_v27 = vsel %vm1102_vm3, %v1101_v19, %v1099_v16 }
 0x242   :  { %v1120_v28 = vsel %vm1111_vm4, %v1104_v26, 0.0  ;;  %v1122_v29 = vsel %vm1112_vm5, %v1106_v27, 0.0 }
 0x243   :  { %v1127_v30 = vadd.f32 %v1123_v24, %v1631_v54  ;;  %v1129_v31 = vadd.f32 %v1125_v25, %v1633_v55  ;;  %v1124_v32 = vadd.f32 %v1120_v28, %v1095_v20  ;;  %v1126_v33 = vadd.f32 %v1122_v29, %v1097_v21 }
 0x245   :  { %v1131_v34 = vmax.f32 %v1127_v30, 0.0  ;;  %v1133_v35 = vmax.f32 %v1129_v31, 0.0  ;;  %v1128_v36 = vadd.f32 %v1124_v32, %v1625_v13  ;;  %v1130_v37 = vadd.f32 %v1126_v33, %v1627_v14 }
 0x247   :  { %1135 = vst [vmem:[#allocation8] sm:$0xff] %v1131_v34  ;;  %1137 = vst [vmem:[#allocation8 + $0x10] sm:$0xff] %v1133_v35  ;;  %v1132_v42 = vmax.f32 %v1128_v36, 0.0  ;;  %v1134_v38 = vmax.f32 %v1130_v37, 0.0 }
 0x249   :  { %1136 = vst [vmem:[#allocation8 + $0x8] sm:$0xff] %v1132_v42  ;;  %1138 = vst [vmem:[#allocation8 + $0x18] sm:$0xff] %v1134_v38 }
 0x24a   :  { %1558 = shalt.err (!%p1555_p5)
}
 0x24b   :  { %1150 = dma.vmem_to_hbm [thread:$0]  %s1145_s14, 512, %s1695_s5, [#allocation4], %s1577_s28, %s1577_s28, %s1578_s29  }
 0x24c   :  { %1571 = dma.done.wait [#allocation4], 512  }
 0x24d   :  { %1572 = vsyncadd [#allocation4], 4294966784 }
 0x24e   :  { %1154 = vsyncpa [#allocation3], 1 }
 0x24f   :  { %1155 = vsyncpa [#allocation6], 1 }
 0x250   :  { %1156 = vsyncpa [#allocation4], 1 }

</bundles_post_ra>
